<compile_context>
chip_gen: v5e
topology: v5e:2x2
jax: 0.10.0
libtpu: 0.0.40
codegen_flags: <defaults>
</compile_context>

<pallas_src>
import jax
import jax.numpy as jnp
from jax.experimental import pallas as pl
from jax.experimental.pallas import tpu as pltpu


def _fused_linear_noise_relu_kernel(x_ref, wt_ref, b_ref, n_ref, o_ref):
    # x_ref: (B, K) f32 ; wt_ref: (K, N) f32 (pre-transposed once at setup)
    # b_ref: (1, N) f32 ; n_ref: (1, N) f32 ; o_ref: (B, N) f32
    y = jax.lax.dot_general(
        x_ref[...],
        wt_ref[...],
        dimension_numbers=(((1,), (0,)), ((), ())),   # (M,K) x (K,N) -> (M,N)
        preferred_element_type=jnp.float32,
    )
    # bias + noise + relu fused on the VPU (free; launch overhead dominates).
    o_ref[...] = jnp.maximum(y + (b_ref[...] + n_ref[...]), 0.0)


def _fused_call(x, w_t, bias2d, noise2d):
    B, K = x.shape
    N = w_t.shape[1]
    cost = pl.CostEstimate(
        flops=2 * B * K * N,
        bytes_accessed=4 * (B * K + K * N + 2 * N + B * N),
        transcendentals=0,
    )
    return pl.pallas_call(
        _fused_linear_noise_relu_kernel,
        out_shape=jax.ShapeDtypeStruct((B, N), jnp.float32),
        in_specs=[
            pl.BlockSpec(memory_space=pltpu.MemorySpace.VMEM),   # x
            pl.BlockSpec(memory_space=pltpu.MemorySpace.VMEM),   # w_t (K, N)
            pl.BlockSpec(memory_space=pltpu.MemorySpace.VMEM),   # bias (1, N)
            pl.BlockSpec(memory_space=pltpu.MemorySpace.VMEM),   # noise (1, N)
        ],
        out_specs=pl.BlockSpec(memory_space=pltpu.MemorySpace.VMEM),
        cost_estimate=cost,
    )(x, w_t, bias2d, noise2d)


@jax.jit
def forward(key, x, w_t, bias2d):
    """One forward pass of the module.

    key:    device-resident PRNG key (threaded by the caller; split on device,
            so there is no host->device transfer per call)
    x:      (B, in) f32
    w_t:    (in, out) f32   -- weight pre-transposed once at parameter setup
    bias2d: (1, out) f32    -- bias reshaped once at parameter setup
    Returns (out, noise, new_key).
    """
    key, sub = jax.random.split(key)
    out_features = w_t.shape[1]
    # torch.normal(mean=3, std=100, (out,)) resampled every forward.
    noise = 3.0 + 100.0 * jax.random.normal(sub, (1, out_features), jnp.float32)
    out = _fused_call(x, w_t, bias2d, noise)
    return out, noise, key


if __name__ == "__main__":
    key = jax.random.PRNGKey(0)
    k_x, k_w, k_b, rng = jax.random.split(key, 4)

    in_features, out_features, batch = 15, 8, 3

    # One-time parameter setup (not per-call hot path).
    bound = 1.0 / float(in_features) ** 0.5
    weight = jax.random.uniform(
        k_w, (out_features, in_features), jnp.float32, -bound, bound
    )
    bias = jax.random.uniform(k_b, (out_features,), jnp.float32, -bound, bound)
    w_t = jnp.asarray(weight.T)                    # (in, out) -- transposed once
    bias2d = bias.reshape(1, out_features)         # (1, out)  -- reshaped once

    # Input: torch.randn(3, 15)
    x2 = jax.random.normal(k_x, (batch, in_features), jnp.float32)

    out, noise, rng = jax.block_until_ready(forward(rng, x2, w_t, bias2d))

    # Correctness: rebuild v3 in plain JAX using the same noise sample,
    # exercising the matmul + bias + noise + relu path exactly.
    ref = jnp.maximum(x2 @ weight.T + bias + noise[0], 0.0)
    assert out.shape == (batch, out_features)
    assert bool(jnp.all(jnp.isfinite(out)))
    assert jnp.allclose(out, ref, atol=1e-2, rtol=1e-3)

    # Per-forward resampling semantics: the threaded key yields new noise.
    out2, noise2, rng = jax.block_until_ready(forward(rng, x2, w_t, bias2d))
    assert not bool(jnp.allclose(noise, noise2))
    assert bool(jnp.all(jnp.isfinite(out2)))

    print("KERNEL_OK")
</pallas_src>

<mosaic_0001>
module attributes {stable_mosaic.version = 11 : i64} {
  func.func @_fused_linear_noise_relu_kernel(%arg0: memref<3x15xf32, #tpu.memory_space<vmem>>, %arg1: memref<15x8xf32, #tpu.memory_space<vmem>>, %arg2: memref<1x8xf32, #tpu.memory_space<vmem>>, %arg3: memref<1x8xf32, #tpu.memory_space<vmem>>, %arg4: memref<3x8xf32, #tpu.memory_space<vmem>>) attributes {dimension_semantics = [], scalar_prefetch = 0 : i64, scratch_operands = 0 : i64, tpu.core_type = #tpu.core_type<tc>} {
    %c0 = arith.constant 0 : index
    %c0_0 = arith.constant 0 : index
    %0 = vector.load %arg0[%c0, %c0_0] : memref<3x15xf32, #tpu.memory_space<vmem>>, vector<3x15xf32>
    %c0_1 = arith.constant 0 : index
    %c0_2 = arith.constant 0 : index
    %1 = vector.load %arg1[%c0_1, %c0_2] : memref<15x8xf32, #tpu.memory_space<vmem>>, vector<15x8xf32>
    %cst = arith.constant dense<0.000000e+00> : vector<3x8xf32>
    %2 = tpu.matmul %0, %1, %cst {dimension_numbers = #tpu.dot_dimension_numbers<[1], [0], [0], [1], [0, 0, 1, 1], [], []>} : vector<3x15xf32>, vector<15x8xf32>, vector<3x8xf32> -> vector<3x8xf32>
    %c0_3 = arith.constant 0 : index
    %c0_4 = arith.constant 0 : index
    %3 = vector.load %arg2[%c0_3, %c0_4] : memref<1x8xf32, #tpu.memory_space<vmem>>, vector<1x8xf32>
    %c0_5 = arith.constant 0 : index
    %c0_6 = arith.constant 0 : index
    %4 = vector.load %arg3[%c0_5, %c0_6] : memref<1x8xf32, #tpu.memory_space<vmem>>, vector<1x8xf32>
    %5 = arith.addf %3, %4 : vector<1x8xf32>
    %6 = vector.broadcast %5 : vector<1x8xf32> to vector<3x8xf32>
    %7 = arith.addf %2, %6 : vector<3x8xf32>
    %cst_7 = arith.constant 0.000000e+00 : f32
    %8 = vector.broadcast %cst_7 : f32 to vector<3x8xf32>
    %9 = arith.maximumf %7, %8 : vector<3x8xf32>
    %c0_8 = arith.constant 0 : index
    %c0_9 = arith.constant 0 : index
    %10 = vector.load %arg4[%c0_8, %c0_9] : memref<3x8xf32, #tpu.memory_space<vmem>>, vector<3x8xf32>
    tpu.vector_store %arg4[%c0_8, %c0_9], %9 {strides = array<i32>} : memref<3x8xf32, #tpu.memory_space<vmem>>, vector<3x8xf32>,
    return
  }
}

</mosaic_0001>

<bundles_post_ra>
// kernel: forward.3
= control target key start
LH: loop header
LB: loop body
LE: loop exit
PB: predicated region body
PF: predicated region fallthrough
CT: control target
= control target key end

     0   :  { %vm31_vm0 = vcmask 1046528   ;;  %vm27_vm1 = vcmask 121856   ;;  %s147_s0 = inlined_call_operand.vmem [shape: f32[3,15], index: 0, kind: input, shape index: {}]   ;;  %s148_s1 = inlined_call_operand.vmem [shape: f32[15,8], index: 1, kind: input, shape index: {}]   ;;  %s149_s2 = inlined_call_operand.vmem [shape: f32[1,8], index: 2, kind: input, shape index: {}]   ;;  %s150_s3 = inlined_call_operand.vmem [shape: f32[1,8], index: 3, kind: input, shape index: {}]   ;;  %s151_s4 = inlined_call_operand.hbm [shape: f32[3,8], index: 4, kind: output, shape index: {}]  }
   0x1   :  { %v20_v0 = vld [vmem:[%s148_s1 + $0x8] sm:$0x7f]  ;;  %v19_v1 = vld [vmem:[%s148_s1] sm:$0xff] }
   0x2   :  { %74 = vmatpush.msk.msra.mxu0 %vm31_vm0, %v20_v0  ;;  %v18_v2 = vld [vmem:[%s147_s0] sm:$0x7] }
   0x3   :  { %9 = vsyncpa [#allocation3], 0  ;;  %v21_v3 = vld [vmem:[%s149_s2] sm:$0x1]  ;;  %s103_s1 = smov [#allocation2]   ;;  %s65_s0 = sshll.u32 %s151_s4, 4  ;;  %s66_s0 = int_to_ptr.hbm [resolvable:$true] %s65_s0 }
   0x4   :  { %50 = vmatpush.msra.mxu0 %v19_v1  ;;  %v22_v4 = vld [vmem:[%s150_s3] sm:$0x1]  ;;  %s63_s25 = sshll.u32 %s103_s1, 4  ;;  %vm56_vm2 = vcmask 59392   ;;  %s64_s25 = int_to_ptr.vmem [resolvable:$true] %s63_s25 }
   0x5   :  { %75 = vmatmul.msk.f32.vlgmr.msra.gmra.mxu0 %vm27_vm1, %v18_v2  ;;  %v23_v5 = vadd.f32 %v22_v4, %v21_v3 }
   0x7   :  { %v25_v6 = vperm.slane %v23_v5, 0 }
  0x82   :  { %v52_v7 = vpop.f32.mrf.mxu0 }
  0x83   :  { %v53_v8 = vadd.f32 %v52_v7, %v25_v6 }
  0x85   :  { %v55_v9 = vmax.f32 %v53_v8, 0.0 }
  0x87   :  { %57 = vst.msk [vmem:[#allocation2] sm:$0x7] %vm56_vm2, %v55_v9 }
  0x88   :  { %68 = dma.vmem_to_hbm [thread:$0]  %s64_s25, 64, %s66_s0, [#allocation3]  }
  0x89   :  { %101 = dma.done.wait [#allocation3], 64  }
  0x8a   :  { %102 = vsyncadd [#allocation3], 4294967232 }
  0x8b   :  { %73 = vsyncpa [#allocation3], 1 }

</bundles_post_ra>
